<compile_context>
chip_gen: v5e
topology: v5e:2x2
jax: 0.10.0
libtpu: 0.0.40
codegen_flags: <defaults>
</compile_context>

<pallas_src>
import jax
import jax.numpy as jnp
import numpy as np
from jax import lax
from jax.experimental import pallas as pl
from jax.experimental.pallas import tpu as pltpu

_BN_EPS = 1e-5
_LANE = 128
_KCONCAT_MAX_CIN = 256


def _round_up(a, b):
    return (a + b - 1) // b * b


def _use_k_concat(cin):
    """Single (m, 9*cin) matmul when the dx-groups are lane aligned (so the
    in-kernel concat is free) and the patch buffer stays small; otherwise 3
    group matmuls accumulated in an f32 VMEM scratch."""
    return (3 * cin) % _LANE == 0 and cin <= _KCONCAT_MAX_CIN


def _pick_nb(n, ho, wo, target_m=512):
    """Images per grid step: keep >= 2 grid steps when N allows (so the
    BlockSpec pipeline overlaps DMA with compute / cores can split the grid),
    keep row blocks sublane-aligned, and keep M = nb*Ho*Wo near the target."""
    hw = ho * wo
    divs = [d for d in range(1, n + 1) if n % d == 0]
    cands = [d for d in divs if (d * hw) % 8 == 0] or [n]
    multi = [d for d in cands if n // d >= 2]
    if multi:
        cands = multi
    under = [d for d in cands if d * hw <= max(target_m, hw)]
    return max(under) if under else min(cands)


def _vmem_limit_bytes():
    """Scoped-VMEM limit per generation: ~40 MiB on 64 MiB parts (v7x),
    ~96 MiB on 128 MiB parts (v5e/v6e)."""
    mib = 1024 * 1024
    try:
        cap = int(pltpu.get_tpu_info().vmem_capacity_bytes)
    except Exception:
        cap = 64 * mib
    return 40 * mib if cap <= 64 * mib else 96 * mib


# ----------------------------------------------------------------------------
# Wrapper-side activation layout: every 3x3 tap becomes a static H-axis slice
# ----------------------------------------------------------------------------
def _prep_tap_groups(x, stride, ho, wo):
    """Lay out the (spatially padded) activation so every 3x3 tap is a static
    slice along the (outer, cheap) H axis of one group tensor, with the three
    dx-shifts pre-concatenated along channels (K-major layout).

    Returns (G, N, Hs, wo, 3*C): G = 1 for stride 1, G = 2 (row parity) for
    stride 2.  Tap (dy, dx) is group g at H offset hoff:
      stride 1: g = 0,      hoff = dy
      stride 2: g = dy % 2, hoff = dy // 2
    with its channels at [dx*C : (dx+1)*C].
    """
    n, h, w, c = x.shape
    if stride == 1:
        xp = jnp.pad(x, ((0, 0), (1, 1), (1, 1), (0, 0)))
        grp = jnp.concatenate([xp[:, :, dx:dx + wo, :] for dx in range(3)],
                              axis=-1)                     # (N, H+2, wo, 3C)
        return grp[None]
    # stride 2: fold row parity and column parity/shift into the wrapper.
    xp = jnp.pad(x, ((0, 0), (1, 2 * ho + 1 - h), (1, 2 * wo + 1 - w), (0, 0)))
    groups = []
    for hp in (0, 1):
        rows = xp[:, hp::2, :, :][:, :ho + 1]              # (N, ho+1, 2wo+2, C)
        groups.append(jnp.concatenate(
            [rows[:, :, dx::2, :][:, :, :wo, :] for dx in range(3)], axis=-1))
    return jnp.stack(groups, axis=0)                       # (2, N, ho+1, wo, 3C)


# ----------------------------------------------------------------------------
# Kernel: 3x3 conv (+ fused shortcut) + bias + ReLU
# ----------------------------------------------------------------------------
def _make_conv_kernel(*, stride, nb, ho, wo, cin3, coutp, relu, res_mode,
                      k_concat):
    m = nb * ho * wo
    if stride == 1:
        groups = [(0, dy) for dy in range(3)]              # (group, H offset)
    else:
        groups = [(dy % 2, dy // 2) for dy in range(3)]

    def load_group(x_ref, g, hoff):
        win = x_ref[g, :, hoff:hoff + ho, :, :]            # (nb, ho, wo, 3C)
        return win.reshape(m, cin3)

    def kernel(*refs):
        x_ref, w_ref, b_ref = refs[0], refs[1], refs[2]
        pos = 3
        r_ref = wr_ref = None
        if res_mode != "none":
            r_ref = refs[pos]
            pos += 1
        if res_mode == "proj":
            wr_ref = refs[pos]
            pos += 1
        o_ref = refs[pos]
        pos += 1

        if k_concat:
            # One MXU matmul; accumulation over the 9 taps stays in the MXU.
            patches = jnp.concatenate(
                [load_group(x_ref, g, hoff) for g, hoff in groups], axis=-1)
            y = jnp.dot(patches, w_ref[...],
                        preferred_element_type=jnp.float32)
        else:
            # 3 group matmuls (K = 3*Cin) accumulated in an f32 VMEM scratch.
            acc_ref = refs[pos]
            for i, (g, hoff) in enumerate(groups):
                part = jnp.dot(load_group(x_ref, g, hoff), w_ref[i],
                               preferred_element_type=jnp.float32)
                if i == 0:
                    acc_ref[...] = part
                else:
                    acc_ref[...] += part
            y = acc_ref[...]

        if res_mode == "identity":
            y = y + r_ref[...].astype(jnp.float32)         # plain f32 add
        elif res_mode == "proj":
            y = y + jnp.dot(r_ref[...], wr_ref[...],
                            preferred_element_type=jnp.float32)
        y = y + b_ref[...]
        if relu:
            y = jnp.maximum(y, 0.0)
        o_ref[...] = y.astype(o_ref.dtype)                 # lane-dense 2D store

    return kernel


# ----------------------------------------------------------------------------
# pallas_call wrapper
# ----------------------------------------------------------------------------
def fused_conv3x3(x, w, bias, *, stride, relu, residual=None, res_w=None,
                  compute_dtype=jnp.bfloat16, out_dtype=jnp.float32):
    """3x3 conv (padding=1) with BN folded into w/bias, optional fused
    shortcut (added pre-ReLU) and ReLU.

      x        : (N, H, W, Cin) activations
      w        : (9*Cin, Coutp) K-concat layout, or (3, 3*Cin, Coutp)
      bias     : (Coutp,) f32   (Coutp % 128 == 0)
      residual : optional (N, Ho, Wo, Cr) shortcut input
      res_w    : (Cr, Coutp) projection weight, or None for identity add
    Returns (N, Ho, Wo, Coutp) in out_dtype.
    """
    assert stride in (1, 2)
    n, h, wdim, cin = x.shape
    coutp = bias.shape[-1]
    ho = (h - 1) // stride + 1
    wo = (wdim - 1) // stride + 1
    nb = _pick_nb(n, ho, wo)
    m_blk = nb * ho * wo
    k_concat = (w.ndim == 2)

    xg = _prep_tap_groups(x.astype(compute_dtype), stride, ho, wo)
    gcnt, _, hsl, _, cin3 = xg.shape
    w = w.astype(compute_dtype)
    bias2d = bias.reshape(1, coutp).astype(jnp.float32)

    res_mode = "none"
    args = [xg, w, bias2d]
    if residual is not None:
        if res_w is None:
            res_mode = "identity"                          # f32 elementwise add
            args.append(residual.astype(jnp.float32).reshape(n * ho * wo, coutp))
        else:
            res_mode = "proj"                              # fused 1x1 conv
            cr = residual.shape[-1]
            args.append(residual.astype(compute_dtype).reshape(n * ho * wo, cr))
            args.append(res_w.astype(compute_dtype))

    kernel = _make_conv_kernel(stride=stride, nb=nb, ho=ho, wo=wo, cin3=cin3,
                               coutp=coutp, relu=relu, res_mode=res_mode,
                               k_concat=k_concat)
    scratch = [] if k_concat else [pltpu.VMEM((m_blk, coutp), jnp.float32)]

    def run(single_buffer_consts):
        # Grid-invariant inputs (weights/bias) don't need double buffering.
        def const_spec(shape):
            zero = (0,) * len(shape)
            if single_buffer_consts:
                return pl.BlockSpec(shape, lambda i: zero,
                                    pipeline_mode=pl.Buffered(1))
            return pl.BlockSpec(shape, lambda i: zero)

        in_specs = [
            pl.BlockSpec((gcnt, nb, hsl, wo, cin3), lambda i: (0, i, 0, 0, 0)),
            const_spec(w.shape),
            const_spec((1, coutp)),
        ]
        if res_mode == "identity":
            in_specs.append(pl.BlockSpec((m_blk, coutp), lambda i: (i, 0)))
        elif res_mode == "proj":
            in_specs.append(pl.BlockSpec((m_blk, args[3].shape[-1]),
                                         lambda i: (i, 0)))
            in_specs.append(const_spec(args[4].shape))

        return pl.pallas_call(
            kernel,
            out_shape=jax.ShapeDtypeStruct((n * ho * wo, coutp), out_dtype),
            grid_spec=pltpu.PrefetchScalarGridSpec(
                num_scalar_prefetch=0,
                grid=(n // nb,),
                in_specs=in_specs,
                out_specs=pl.BlockSpec((m_blk, coutp), lambda i: (i, 0)),
                scratch_shapes=scratch,
            ),
            compiler_params=pltpu.CompilerParams(
                dimension_semantics=("parallel",),
                vmem_limit_bytes=_vmem_limit_bytes()),
        )(*args)

    try:
        out2d = run(True)
    except Exception:   # fallback if pipeline_mode / Buffered(1) is unsupported
        out2d = run(False)

    return out2d.reshape(n, ho, wo, coutp)


# ----------------------------------------------------------------------------
# BasicBlock: one-time BN folding + forward
# ----------------------------------------------------------------------------
def fold_bn(bn, eps=_BN_EPS):
    scale = bn["gamma"] * lax.rsqrt(bn["var"] + eps)
    return scale, bn["beta"] - bn["mean"] * scale


def prepare_basic_block(params, stride, compute_dtype=jnp.bfloat16):
    """Fold eval-mode BatchNorm into the conv weights/bias once (inference
    constants; re-deriving them every forward call is pure overhead)."""
    w1, w2 = params["w1"], params["w2"]
    cin, planes = w1.shape[2], w1.shape[3]
    coutp = _round_up(planes, _LANE)
    pad_c = coutp - planes

    def fold3x3(w_hwio, scale, cin_pad):
        ws = w_hwio * scale[None, None, None, :]
        ws = jnp.pad(ws, ((0, 0), (0, 0), (0, cin_pad - w_hwio.shape[2]),
                          (0, pad_c)))
        w2d = ws.reshape(9 * cin_pad, coutp)          # rows ordered (dy, dx, cin)
        if not _use_k_concat(cin_pad):
            w2d = w2d.reshape(3, 3 * cin_pad, coutp)
        return w2d.astype(compute_dtype)

    s1, b1 = fold_bn(params["bn1"])
    s2, b2 = fold_bn(params["bn2"])
    prep = dict(stride=stride, planes=planes, coutp=coutp,
                compute_dtype=compute_dtype,
                w1=fold3x3(w1, s1, cin),
                b1=jnp.pad(b1, (0, pad_c)),
                w2=fold3x3(w2, s2, coutp),
                b2=jnp.pad(b2, (0, pad_c)))
    if "wsc" in params:
        ssc, bsc = fold_bn(params["bnsc"])
        wsc = params["wsc"].reshape(cin, planes) * ssc[None, :]
        prep["wsc"] = jnp.pad(wsc, ((0, 0), (0, pad_c))).astype(compute_dtype)
        prep["b2"] = prep["b2"] + jnp.pad(bsc, (0, pad_c))
    return prep


def basic_block_forward(x, prep):
    """x: (N, H, W, Cin) f32 NHWC -> (N, Ho, Wo, planes) f32 NHWC."""
    stride, planes, coutp = prep["stride"], prep["planes"], prep["coutp"]
    cdt = prep["compute_dtype"]
    # conv1 + bn1 + ReLU; output kept in compute dtype to halve conv1->conv2
    # HBM traffic and the wrapper shift/pad copies feeding conv2.
    out1 = fused_conv3x3(x, prep["w1"], prep["b1"], stride=stride, relu=True,
                         compute_dtype=cdt, out_dtype=cdt)
    if "wsc" in prep:
        # Projection shortcut: fused into conv2 as one small extra matmul.
        xs = x[:, ::stride, ::stride, :]
        out = fused_conv3x3(out1, prep["w2"], prep["b2"], stride=1, relu=True,
                            residual=xs, res_w=prep["wsc"], compute_dtype=cdt,
                            out_dtype=jnp.float32)
    else:
        # Identity shortcut: plain f32 elementwise add in the conv2 epilogue.
        res = x if coutp == planes else jnp.pad(
            x, ((0, 0), (0, 0), (0, 0), (0, coutp - planes)))
        out = fused_conv3x3(out1, prep["w2"], prep["b2"], stride=1, relu=True,
                            residual=res, res_w=None, compute_dtype=cdt,
                            out_dtype=jnp.float32)
    return out[..., :planes]


# ----------------------------------------------------------------------------
# Pure-JAX reference
# ----------------------------------------------------------------------------
def _conv_ref(x, w, stride, pad):
    return lax.conv_general_dilated(
        x, w, (stride, stride), ((pad, pad), (pad, pad)),
        dimension_numbers=("NHWC", "HWIO", "NHWC"))


def _bn_ref(x, bn):
    s, b = fold_bn(bn)
    return x * s + b


def basic_block_ref(x, params, stride):
    out = jax.nn.relu(_bn_ref(_conv_ref(x, params["w1"], stride, 1),
                              params["bn1"]))
    out = _bn_ref(_conv_ref(out, params["w2"], 1, 1), params["bn2"])
    if "wsc" in params:
        sc = _bn_ref(_conv_ref(x, params["wsc"], stride, 0), params["bnsc"])
    else:
        sc = x
    return jax.nn.relu(out + sc)


# ----------------------------------------------------------------------------
# Deterministic parameters + driver
# ----------------------------------------------------------------------------
def make_params(key, in_planes, planes, stride):
    ks = jax.random.split(key, 16)

    def bn_params(k, c):
        k1, k2, k3, k4 = jax.random.split(k, 4)
        return dict(
            gamma=jax.random.uniform(k1, (c,), jnp.float32, 0.5, 1.5),
            beta=0.1 * jax.random.normal(k2, (c,), jnp.float32),
            mean=0.1 * jax.random.normal(k3, (c,), jnp.float32),
            var=jax.random.uniform(k4, (c,), jnp.float32, 0.5, 1.5),
        )

    params = dict(
        w1=0.2 * jax.random.normal(ks[0], (3, 3, in_planes, planes),
                                   jnp.float32),
        bn1=bn_params(ks[1], planes),
        w2=0.2 * jax.random.normal(ks[2], (3, 3, planes, planes), jnp.float32),
        bn2=bn_params(ks[3], planes),
    )
    if stride != 1 or in_planes != planes:
        params["wsc"] = 0.2 * jax.random.normal(
            ks[4], (1, 1, in_planes, planes), jnp.float32)
        params["bnsc"] = bn_params(ks[5], planes)
    return params


if __name__ == "__main__":
    key = jax.random.PRNGKey(0)
    k_x1, k_p1, k_x2, k_p2 = jax.random.split(key, 4)

    # Config A: downsampling block with projection shortcut.
    n, cin, h, w = 2, 4, 16, 16
    planes, stride = 8, 2
    x = jnp.transpose(jax.random.normal(k_x1, (n, cin, h, w), jnp.float32),
                      (0, 2, 3, 1))                                # NHWC
    params = make_params(k_p1, cin, planes, stride)
    ref = jax.block_until_ready(basic_block_ref(x, params, stride))

    # Exact path: f32 MXU operands.
    prep32 = prepare_basic_block(params, stride, compute_dtype=jnp.float32)
    out32 = jax.block_until_ready(basic_block_forward(x, prep32))
    np.testing.assert_allclose(np.asarray(out32), np.asarray(ref),
                               rtol=1e-4, atol=1e-4)

    # Default fast path: bf16 MXU operands, f32 accumulation.
    prep16 = prepare_basic_block(params, stride)
    out16 = jax.block_until_ready(basic_block_forward(x, prep16))
    np.testing.assert_allclose(np.asarray(out16), np.asarray(ref),
                               rtol=1e-1, atol=2e-1)

    # Config B: identity-shortcut block (stride 1, in_planes == planes).
    x2 = jnp.transpose(jax.random.normal(k_x2, (n, planes, h, w), jnp.float32),
                       (0, 2, 3, 1))
    params2 = make_params(k_p2, planes, planes, 1)
    ref2 = jax.block_until_ready(basic_block_ref(x2, params2, 1))

    prep2_32 = prepare_basic_block(params2, 1, compute_dtype=jnp.float32)
    out2_32 = jax.block_until_ready(basic_block_forward(x2, prep2_32))
    np.testing.assert_allclose(np.asarray(out2_32), np.asarray(ref2),
                               rtol=1e-4, atol=1e-4)

    prep2_16 = prepare_basic_block(params2, 1)
    out2_16 = jax.block_until_ready(basic_block_forward(x2, prep2_16))
    np.testing.assert_allclose(np.asarray(out2_16), np.asarray(ref2),
                               rtol=1e-1, atol=2e-1)

    print("KERNEL_OK")
</pallas_src>

<mosaic_0001>
module attributes {stable_mosaic.version = 11 : i64} {
  func.func @kernel(%arg0: i32, %arg1: memref<2x1x9x8x12xf32, #tpu.memory_space<vmem>>, %arg2: memref<3x12x128xf32, #tpu.memory_space<vmem>>, %arg3: memref<1x128xf32, #tpu.memory_space<vmem>>, %arg4: memref<64x128xf32, #tpu.memory_space<vmem>>, %arg5: memref<64x128xf32, #tpu.memory_space<vmem>>) attributes {dimension_semantics = [#tpu.dimension_semantics<parallel>], iteration_bounds = array<i64: 2>, scalar_prefetch = 0 : i64, scratch_operands = 1 : i64, tpu.core_type = #tpu.core_type<tc>, window_params = [{transform_indices = @transform_0, window_bounds = array<i64: 2, 1, 9, 8, 12>}, {pipeline_mode = #tpu.pipeline_mode<synchronous>, transform_indices = @transform_1, window_bounds = array<i64: 3, 12, 128>}, {pipeline_mode = #tpu.pipeline_mode<synchronous>, transform_indices = @transform_2, window_bounds = array<i64: 1, 128>}, {transform_indices = @transform_3, window_bounds = array<i64: 64, 128>}]} {
    %c0 = arith.constant 0 : index
    %c0_0 = arith.constant 0 : index
    %c0_1 = arith.constant 0 : index
    %c0_2 = arith.constant 0 : index
    %c0_3 = arith.constant 0 : index
    %0 = vector.load %arg1[%c0, %c0_0, %c0_1, %c0_2, %c0_3] : memref<2x1x9x8x12xf32, #tpu.memory_space<vmem>>, vector<1x1x8x8x12xf32>
    %1 = vector.shape_cast %0 : vector<1x1x8x8x12xf32> to vector<1x8x8x12xf32>
    %2 = vector.shape_cast %1 : vector<1x8x8x12xf32> to vector<64x12xf32>
    %c0_4 = arith.constant 0 : index
    %c0_5 = arith.constant 0 : index
    %c0_6 = arith.constant 0 : index
    %3 = vector.load %arg2[%c0_4, %c0_5, %c0_6] : memref<3x12x128xf32, #tpu.memory_space<vmem>>, vector<1x12x128xf32>
    %4 = vector.shape_cast %3 : vector<1x12x128xf32> to vector<12x128xf32>
    %cst = arith.constant dense<0.000000e+00> : vector<64x128xf32>
    %5 = tpu.matmul %2, %4, %cst {dimension_numbers = #tpu.dot_dimension_numbers<[1], [0], [0], [1], [0, 0, 1, 1], [], []>} : vector<64x12xf32>, vector<12x128xf32>, vector<64x128xf32> -> vector<64x128xf32>
    %c0_7 = arith.constant 0 : index
    %c0_8 = arith.constant 0 : index
    %6 = vector.load %arg5[%c0_7, %c0_8] : memref<64x128xf32, #tpu.memory_space<vmem>>, vector<64x128xf32>
    tpu.vector_store %arg5[%c0_7, %c0_8], %5 {strides = array<i32>} : memref<64x128xf32, #tpu.memory_space<vmem>>, vector<64x128xf32>,
    %c1 = arith.constant 1 : index
    %c0_9 = arith.constant 0 : index
    %c0_10 = arith.constant 0 : index
    %c0_11 = arith.constant 0 : index
    %c0_12 = arith.constant 0 : index
    %7 = vector.load %arg1[%c1, %c0_9, %c0_10, %c0_11, %c0_12] : memref<2x1x9x8x12xf32, #tpu.memory_space<vmem>>, vector<1x1x8x8x12xf32>
    %8 = vector.shape_cast %7 : vector<1x1x8x8x12xf32> to vector<1x8x8x12xf32>
    %9 = vector.shape_cast %8 : vector<1x8x8x12xf32> to vector<64x12xf32>
    %c1_13 = arith.constant 1 : index
    %c0_14 = arith.constant 0 : index
    %c0_15 = arith.constant 0 : index
    %10 = vector.load %arg2[%c1_13, %c0_14, %c0_15] : memref<3x12x128xf32, #tpu.memory_space<vmem>>, vector<1x12x128xf32>
    %11 = vector.shape_cast %10 : vector<1x12x128xf32> to vector<12x128xf32>
    %cst_16 = arith.constant dense<0.000000e+00> : vector<64x128xf32>
    %12 = tpu.matmul %9, %11, %cst_16 {dimension_numbers = #tpu.dot_dimension_numbers<[1], [0], [0], [1], [0, 0, 1, 1], [], []>} : vector<64x12xf32>, vector<12x128xf32>, vector<64x128xf32> -> vector<64x128xf32>
    %c0_17 = arith.constant 0 : index
    %c0_18 = arith.constant 0 : index
    %13 = vector.load %arg5[%c0_17, %c0_18] : memref<64x128xf32, #tpu.memory_space<vmem>>, vector<64x128xf32>
    %14 = arith.addf %13, %12 : vector<64x128xf32>
    %c0_19 = arith.constant 0 : index
    %c0_20 = arith.constant 0 : index
    %15 = vector.load %arg5[%c0_19, %c0_20] : memref<64x128xf32, #tpu.memory_space<vmem>>, vector<64x128xf32>
    tpu.vector_store %arg5[%c0_19, %c0_20], %14 {strides = array<i32>} : memref<64x128xf32, #tpu.memory_space<vmem>>, vector<64x128xf32>,
    %c0_21 = arith.constant 0 : index
    %c0_22 = arith.constant 0 : index
    %c1_23 = arith.constant 1 : index
    %c0_24 = arith.constant 0 : index
    %c0_25 = arith.constant 0 : index
    %16 = vector.load %arg1[%c0_21, %c0_22, %c1_23, %c0_24, %c0_25] : memref<2x1x9x8x12xf32, #tpu.memory_space<vmem>>, vector<1x1x8x8x12xf32>
    %17 = vector.shape_cast %16 : vector<1x1x8x8x12xf32> to vector<1x8x8x12xf32>
    %18 = vector.shape_cast %17 : vector<1x8x8x12xf32> to vector<64x12xf32>
    %c2 = arith.constant 2 : index
    %c0_26 = arith.constant 0 : index
    %c0_27 = arith.constant 0 : index
    %19 = vector.load %arg2[%c2, %c0_26, %c0_27] : memref<3x12x128xf32, #tpu.memory_space<vmem>>, vector<1x12x128xf32>
    %20 = vector.shape_cast %19 : vector<1x12x128xf32> to vector<12x128xf32>
    %cst_28 = arith.constant dense<0.000000e+00> : vector<64x128xf32>
    %21 = tpu.matmul %18, %20, %cst_28 {dimension_numbers = #tpu.dot_dimension_numbers<[1], [0], [0], [1], [0, 0, 1, 1], [], []>} : vector<64x12xf32>, vector<12x128xf32>, vector<64x128xf32> -> vector<64x128xf32>
    %c0_29 = arith.constant 0 : index
    %c0_30 = arith.constant 0 : index
    %22 = vector.load %arg5[%c0_29, %c0_30] : memref<64x128xf32, #tpu.memory_space<vmem>>, vector<64x128xf32>
    %23 = arith.addf %22, %21 : vector<64x128xf32>
    %c0_31 = arith.constant 0 : index
    %c0_32 = arith.constant 0 : index
    %24 = vector.load %arg5[%c0_31, %c0_32] : memref<64x128xf32, #tpu.memory_space<vmem>>, vector<64x128xf32>
    tpu.vector_store %arg5[%c0_31, %c0_32], %23 {strides = array<i32>} : memref<64x128xf32, #tpu.memory_space<vmem>>, vector<64x128xf32>,
    %c0_33 = arith.constant 0 : index
    %c0_34 = arith.constant 0 : index
    %25 = vector.load %arg5[%c0_33, %c0_34] : memref<64x128xf32, #tpu.memory_space<vmem>>, vector<64x128xf32>
    %c0_35 = arith.constant 0 : index
    %c0_36 = arith.constant 0 : index
    %26 = vector.load %arg3[%c0_35, %c0_36] : memref<1x128xf32, #tpu.memory_space<vmem>>, vector<1x128xf32>
    %27 = vector.broadcast %26 : vector<1x128xf32> to vector<64x128xf32>
    %28 = arith.addf %25, %27 : vector<64x128xf32>
    %cst_37 = arith.constant 0.000000e+00 : f32
    %29 = vector.broadcast %cst_37 : f32 to vector<64x128xf32>
    %30 = arith.maximumf %28, %29 : vector<64x128xf32>
    %c0_38 = arith.constant 0 : index
    %c0_39 = arith.constant 0 : index
    %31 = vector.load %arg4[%c0_38, %c0_39] : memref<64x128xf32, #tpu.memory_space<vmem>>, vector<64x128xf32>
    tpu.vector_store %arg4[%c0_38, %c0_39], %30 {strides = array<i32>} : memref<64x128xf32, #tpu.memory_space<vmem>>, vector<64x128xf32>,
    return
  }
  func.func @transform_0(%arg0: i32) -> (i32, i32, i32, i32, i32) {
    %c0_i32 = arith.constant 0 : i32
    %c0_i32_0 = arith.constant 0 : i32
    %c0_i32_1 = arith.constant 0 : i32
    %c0_i32_2 = arith.constant 0 : i32
    %c0_i32_3 = arith.constant 0 : i32
    return %c0_i32, %arg0, %c0_i32_0, %c0_i32_1, %c0_i32_2 : i32, i32, i32, i32, i32
  }
  func.func @transform_1(%arg0: i32) -> (i32, i32, i32) {
    %c0_i32 = arith.constant 0 : i32
    %c0_i32_0 = arith.constant 0 : i32
    %c0_i32_1 = arith.constant 0 : i32
    %c0_i32_2 = arith.constant 0 : i32
    return %c0_i32, %c0_i32_0, %c0_i32_1 : i32, i32, i32
  }
  func.func @transform_2(%arg0: i32) -> (i32, i32) {
    %c0_i32 = arith.constant 0 : i32
    %c0_i32_0 = arith.constant 0 : i32
    %c0_i32_1 = arith.constant 0 : i32
    return %c0_i32, %c0_i32_0 : i32, i32
  }
  func.func @transform_3(%arg0: i32) -> (i32, i32) {
    %c0_i32 = arith.constant 0 : i32
    %c0_i32_0 = arith.constant 0 : i32
    return %arg0, %c0_i32 : i32, i32
  }
}

module attributes {stable_mosaic.version = 11 : i64} {
  func.func @kernel(%arg0: i32, %arg1: memref<2x1x9x8x12xf32, #tpu.memory_space<vmem>>, %arg2: memref<3x12x128xf32, #tpu.memory_space<vmem>>, %arg3: memref<1x128xf32, #tpu.memory_space<vmem>>, %arg4: memref<64x128xf32, #tpu.memory_space<vmem>>, %arg5: memref<64x128xf32, #tpu.memory_space<vmem>>) attributes {dimension_semantics = [#tpu.dimension_semantics<parallel>], iteration_bounds = array<i64: 2>, scalar_prefetch = 0 : i64, scratch_operands = 1 : i64, tpu.core_type = #tpu.core_type<tc>, window_params = [{transform_indices = @transform_0, window_bounds = array<i64: 2, 1, 9, 8, 12>}, {pipeline_mode = #tpu.pipeline_mode<synchronous>, transform_indices = @transform_1, window_bounds = array<i64: 3, 12, 128>}, {pipeline_mode = #tpu.pipeline_mode<synchronous>, transform_indices = @transform_2, window_bounds = array<i64: 1, 128>}, {transform_indices = @transform_3, window_bounds = array<i64: 64, 128>}]} {
    %c0 = arith.constant 0 : index
    %c0_0 = arith.constant 0 : index
    %c0_1 = arith.constant 0 : index
    %c0_2 = arith.constant 0 : index
    %c0_3 = arith.constant 0 : index
    %0 = vector.load %arg1[%c0, %c0_0, %c0_1, %c0_2, %c0_3] : memref<2x1x9x8x12xf32, #tpu.memory_space<vmem>>, vector<1x1x8x8x12xf32>
    %1 = vector.shape_cast %0 : vector<1x1x8x8x12xf32> to vector<1x8x8x12xf32>
    %2 = vector.shape_cast %1 : vector<1x8x8x12xf32> to vector<64x12xf32>
    %c0_4 = arith.constant 0 : index
    %c0_5 = arith.constant 0 : index
    %c0_6 = arith.constant 0 : index
    %3 = vector.load %arg2[%c0_4, %c0_5, %c0_6] : memref<3x12x128xf32, #tpu.memory_space<vmem>>, vector<1x12x128xf32>
    %4 = vector.shape_cast %3 : vector<1x12x128xf32> to vector<12x128xf32>
    %cst = arith.constant dense<0.000000e+00> : vector<64x128xf32>
    %5 = tpu.matmul %2, %4, %cst {dimension_numbers = #tpu.dot_dimension_numbers<[1], [0], [0], [1], [0, 0, 1, 1], [], []>} : vector<64x12xf32>, vector<12x128xf32>, vector<64x128xf32> -> vector<64x128xf32>
    %c0_7 = arith.constant 0 : index
    %c0_8 = arith.constant 0 : index
    %6 = vector.load %arg5[%c0_7, %c0_8] : memref<64x128xf32, #tpu.memory_space<vmem>>, vector<64x128xf32>
    tpu.vector_store %arg5[%c0_7, %c0_8], %5 {strides = array<i32>} : memref<64x128xf32, #tpu.memory_space<vmem>>, vector<64x128xf32>,
    %c1 = arith.constant 1 : index
    %c0_9 = arith.constant 0 : index
    %c0_10 = arith.constant 0 : index
    %c0_11 = arith.constant 0 : index
    %c0_12 = arith.constant 0 : index
    %7 = vector.load %arg1[%c1, %c0_9, %c0_10, %c0_11, %c0_12] : memref<2x1x9x8x12xf32, #tpu.memory_space<vmem>>, vector<1x1x8x8x12xf32>
    %8 = vector.shape_cast %7 : vector<1x1x8x8x12xf32> to vector<1x8x8x12xf32>
    %9 = vector.shape_cast %8 : vector<1x8x8x12xf32> to vector<64x12xf32>
    %c1_13 = arith.constant 1 : index
    %c0_14 = arith.constant 0 : index
    %c0_15 = arith.constant 0 : index
    %10 = vector.load %arg2[%c1_13, %c0_14, %c0_15] : memref<3x12x128xf32, #tpu.memory_space<vmem>>, vector<1x12x128xf32>
    %11 = vector.shape_cast %10 : vector<1x12x128xf32> to vector<12x128xf32>
    %cst_16 = arith.constant dense<0.000000e+00> : vector<64x128xf32>
    %12 = tpu.matmul %9, %11, %cst_16 {dimension_numbers = #tpu.dot_dimension_numbers<[1], [0], [0], [1], [0, 0, 1, 1], [], []>} : vector<64x12xf32>, vector<12x128xf32>, vector<64x128xf32> -> vector<64x128xf32>
    %c0_17 = arith.constant 0 : index
    %c0_18 = arith.constant 0 : index
    %13 = vector.load %arg5[%c0_17, %c0_18] : memref<64x128xf32, #tpu.memory_space<vmem>>, vector<64x128xf32>
    %14 = arith.addf %13, %12 : vector<64x128xf32>
    %c0_19 = arith.constant 0 : index
    %c0_20 = arith.constant 0 : index
    %15 = vector.load %arg5[%c0_19, %c0_20] : memref<64x128xf32, #tpu.memory_space<vmem>>, vector<64x128xf32>
    tpu.vector_store %arg5[%c0_19, %c0_20], %14 {strides = array<i32>} : memref<64x128xf32, #tpu.memory_space<vmem>>, vector<64x128xf32>,
    %c0_21 = arith.constant 0 : index
    %c0_22 = arith.constant 0 : index
    %c1_23 = arith.constant 1 : index
    %c0_24 = arith.constant 0 : index
    %c0_25 = arith.constant 0 : index
    %16 = vector.load %arg1[%c0_21, %c0_22, %c1_23, %c0_24, %c0_25] : memref<2x1x9x8x12xf32, #tpu.memory_space<vmem>>, vector<1x1x8x8x12xf32>
    %17 = vector.shape_cast %16 : vector<1x1x8x8x12xf32> to vector<1x8x8x12xf32>
    %18 = vector.shape_cast %17 : vector<1x8x8x12xf32> to vector<64x12xf32>
    %c2 = arith.constant 2 : index
    %c0_26 = arith.constant 0 : index
    %c0_27 = arith.constant 0 : index
    %19 = vector.load %arg2[%c2, %c0_26, %c0_27] : memref<3x12x128xf32, #tpu.memory_space<vmem>>, vector<1x12x128xf32>
    %20 = vector.shape_cast %19 : vector<1x12x128xf32> to vector<12x128xf32>
    %cst_28 = arith.constant dense<0.000000e+00> : vector<64x128xf32>
    %21 = tpu.matmul %18, %20, %cst_28 {dimension_numbers = #tpu.dot_dimension_numbers<[1], [0], [0], [1], [0, 0, 1, 1], [], []>} : vector<64x12xf32>, vector<12x128xf32>, vector<64x128xf32> -> vector<64x128xf32>
    %c0_29 = arith.constant 0 : index
    %c0_30 = arith.constant 0 : index
    %22 = vector.load %arg5[%c0_29, %c0_30] : memref<64x128xf32, #tpu.memory_space<vmem>>, vector<64x128xf32>
    %23 = arith.addf %22, %21 : vector<64x128xf32>
    %c0_31 = arith.constant 0 : index
    %c0_32 = arith.constant 0 : index
    %24 = vector.load %arg5[%c0_31, %c0_32] : memref<64x128xf32, #tpu.memory_space<vmem>>, vector<64x128xf32>
    tpu.vector_store %arg5[%c0_31, %c0_32], %23 {strides = array<i32>} : memref<64x128xf32, #tpu.memory_space<vmem>>, vector<64x128xf32>,
    %c0_33 = arith.constant 0 : index
    %c0_34 = arith.constant 0 : index
    %25 = vector.load %arg5[%c0_33, %c0_34] : memref<64x128xf32, #tpu.memory_space<vmem>>, vector<64x128xf32>
    %c0_35 = arith.constant 0 : index
    %c0_36 = arith.constant 0 : index
    %26 = vector.load %arg3[%c0_35, %c0_36] : memref<1x128xf32, #tpu.memory_space<vmem>>, vector<1x128xf32>
    %27 = vector.broadcast %26 : vector<1x128xf32> to vector<64x128xf32>
    %28 = arith.addf %25, %27 : vector<64x128xf32>
    %cst_37 = arith.constant 0.000000e+00 : f32
    %29 = vector.broadcast %cst_37 : f32 to vector<64x128xf32>
    %30 = arith.maximumf %28, %29 : vector<64x128xf32>
    %c0_38 = arith.constant 0 : index
    %c0_39 = arith.constant 0 : index
    %31 = vector.load %arg4[%c0_38, %c0_39] : memref<64x128xf32, #tpu.memory_space<vmem>>, vector<64x128xf32>
    tpu.vector_store %arg4[%c0_38, %c0_39], %30 {strides = array<i32>} : memref<64x128xf32, #tpu.memory_space<vmem>>, vector<64x128xf32>,
    return
  }
  func.func @transform_0(%arg0: i32) -> (i32, i32, i32, i32, i32) {
    %c0_i32 = arith.constant 0 : i32
    %c0_i32_0 = arith.constant 0 : i32
    %c0_i32_1 = arith.constant 0 : i32
    %c0_i32_2 = arith.constant 0 : i32
    %c0_i32_3 = arith.constant 0 : i32
    return %c0_i32, %arg0, %c0_i32_0, %c0_i32_1, %c0_i32_2 : i32, i32, i32, i32, i32
  }
  func.func @transform_1(%arg0: i32) -> (i32, i32, i32) {
    %c0_i32 = arith.constant 0 : i32
    %c0_i32_0 = arith.constant 0 : i32
    %c0_i32_1 = arith.constant 0 : i32
    %c0_i32_2 = arith.constant 0 : i32
    return %c0_i32, %c0_i32_0, %c0_i32_1 : i32, i32, i32
  }
  func.func @transform_2(%arg0: i32) -> (i32, i32) {
    %c0_i32 = arith.constant 0 : i32
    %c0_i32_0 = arith.constant 0 : i32
    %c0_i32_1 = arith.constant 0 : i32
    return %c0_i32, %c0_i32_0 : i32, i32
  }
  func.func @transform_3(%arg0: i32) -> (i32, i32) {
    %c0_i32 = arith.constant 0 : i32
    %c0_i32_0 = arith.constant 0 : i32
    return %arg0, %c0_i32 : i32, i32
  }
}

</mosaic_0001>

<bundles_post_ra>
// kernel: tpu_custom_call.1
= control target key start
LH: loop header
LB: loop body
LE: loop exit
PB: predicated region body
PF: predicated region fallthrough
CT: control target
= control target key end

     0   :  { %8 = vsyncpa [#allocation4], 0  ;;  %s1153_s0 = inlined_call_operand.hbm [shape: f32[2,2,9,8,12], index: 0, kind: input, shape index: {}]   ;;  %s1154_s1 = inlined_call_operand.hbm [shape: f32[3,12,128], index: 1, kind: input, shape index: {}]   ;;  %s1155_s2 = inlined_call_operand.vmem [shape: f32[1,128], index: 2, kind: input, shape index: {}]   ;;  %s1156_s3 = inlined_call_operand.hbm [shape: f32[128,128], index: 3, kind: output, shape index: {}]  }
   0x1   :  { %10 = vsyncpa [#allocation4 + $0x1], 0 }
   0x2   :  { %11 = vsyncpa [#allocation7], 0 }
   0x3   :  { %12 = vsyncpa [#allocation5], 0 }
   0x4   :  { %14 = vsyncpa [#allocation5 + $0x1], 0  ;;  %s936_s12 = smov 0   ;;  %s938_s13 = smov 0  }
   0x5   :  { %s940_s14 = smov 0   ;;  %s942_s15 = smov 0  }
   0x6 LB: > { %s957_s16 = sadd.s32 4294967295, %s903_s15   ;;  %s665_s17 = sadd.s32 4294967294, %s903_s15   ;;  %s903_s15 = sphi %s942_s15, %s1165_s15   ;;  %s899_s14 = sphi %s940_s14, %s1164_s14   ;;  %s895_s13 = sphi %s938_s13, %s1163_s13   ;;  %s891_s12 = sphi %s936_s12, %s1162_s12  }
   0x7   : > { %s961_s18 = sadd.s32 1, %s903_s15   ;;  %s27_s19 = sadd.s32 1, %s899_s14 }
   0x8   : > { %s24_s20 = ssub.s32 %s903_s15, %s961_s18  ;;  %p34_p0 = scmp.ne.s32.totalorder %s899_s14, %s895_s13 }
   0x9   : > { %p25_p1 = scmp.eq.s32.totalorder %s24_s20, 0  ;;  %p35_p2 = scmp.eq.s32.totalorder %s903_s15, 0 }
   0xa   : > { %p40_p3 = scmp.ne.s32.totalorder %s895_s13, %s891_s12  ;;  %p41_p4 = scmp.eq.s32.totalorder %s957_s16, 0 }
   0xb   : > { %s973_s21 = scalar_select %p25_p1, %s899_s14, %s27_s19  }
   0xc   : > { %p975_p5 = por %p35_p2, %p34_p0  ;;  %p981_p6 = por %p41_p4, %p40_p3 }
   0xd   : > { %p106_p7 = scmp.eq.s32.totalorder %s957_s16, 1  ;;  %p112_p8 = scmp.eq.s32.totalorder %s665_s17, 1 }
   0xe   : > { %p666_p9 = scmp.ge.s32.totalorder %s903_s15, 1  ;;  %p119_p10 = scmp.lt.s32.totalorder %s903_s15, 3 }
   0xf   : > { %p988_p11 = por %p106_p7, %p34_p0  ;;  %p992_p12 = por %p112_p8, %p40_p3 }
  0x10   : > { %p996_p13 = pnand %p666_p9, %p119_p10  ;;  %s130_s29 = sshll.u32 %s1154_s1, 4  ;;  %s131_s29 = int_to_ptr.hbm [resolvable:$true] %s130_s29 }
  0x11   : > { %s905_s30 = smov [#allocation6]   ;;  %s906_s5 = smov 128  }
  0x12   : > { %p748_p1 = pneg %p996_p13  ;;  %s132_s4 = sshll.u32 %s905_s30, 4  ;;  %s133_s4 = int_to_ptr.vmem [resolvable:$true] %s132_s4 }
  0x13   : > { %s907_s6 = smov 8   ;;  %p668_p2 = scmp.ge.s32.totalorder %s903_s15, 2 }
  0x14   : > { %p749_p0 = pnand %p748_p1, %p41_p4 }
  0x15   : > { %145 = sbr.rel (%p668_p2) target bundleno = 41 (0x29), region = 24 }
  0x16   : > { %751 = dma.hbm_to_vmem [thread:$0]  (!%p749_p0), %s131_s29, 768, %s133_s4, [#allocation7], %s906_s5, %s906_s5, %s907_s6  }
  0x1a   : > { %s149_s7 = sand.u32 1, %s899_s14   ;;  %s731_s8 = smul.u32 72, %s903_s15 }
  0x1b   : > { %s730_s9 = smul.u32 144, %s149_s7  ;;  %s908_s30 = smov 2304  }
  0x1c   : > { %s158_s17 = scalar_lea.hbm %s1153_s0, %s731_s8  ;;  %736 = sst [smem:[#allocation10]] (%p975_p5), %s908_s30 }
  0x1d   : > { %s171_s19 = sshll.u32 %s158_s17, 4  ;;  %s153_s27 = scalar_lea.vmem [#allocation3], %s730_s9  ;;  %s172_s19 = int_to_ptr.hbm [resolvable:$true] %s171_s19 }
  0x1e   : > { %s735_s20 = scalar_select %p975_p5, [#allocation0], [#allocation11] }
  0x1f   : > { %s173_s28 = sshll.u32 %s153_s27, 4  ;;  %s909_s4 = smov 1152   ;;  %s174_s28 = int_to_ptr.vmem [resolvable:$true] %s173_s28 }
  0x20   : > { %s163_s29 = sld [smem:[%s735_s20]]   ;;  %s910_s5 = smov 9  }
  0x21   : > { %737 = sst [smem:[#allocation10 + $0x1]] (%p975_p5), %s909_s4  ;;  %s911_s6 = smov 128  }
  0x22   : > { %738 = sst [smem:[#allocation10 + $0x2]] (%p975_p5), %s910_s5  ;;  %s912_s9 = smov 8  }
  0x23   : > { %739 = sst [smem:[#allocation10 + $0x3]] (%p975_p5), %s911_s6  ;;  %s150_s11 = scalar_lea.sflag [#allocation4], %s149_s7 }
  0x24   : > { %740 = sst [smem:[#allocation10 + $0x4]] (%p975_p5), %s911_s6  ;;  %s913_s17 = smov [#allocation9]  }
  0x25   : > { %741 = sst [smem:[#allocation10 + $0x5]] (%p975_p5), %s912_s9 }
  0x26   : > { %s670_s8 = sshll.u32 %s163_s29, 26 }
  0x27   : > { %s671_s10 = sadd.s32 134217728, %s670_s8 }
  0x28   : > { %742 = dma.general (%p975_p5), %s172_s19, 2304, %s174_s28, %s150_s11, %s913_s17, [#allocation10], %s671_s10, 0  }
  0x29 PF: > { %198 = sbr.rel (%p996_p13) target bundleno = 236 (0xec), region = 32  ;;  %s1034_s20 = sand.u32 (!%p996_p13), 1, %s895_s13  }
  0x2a   : > { %s732_s27 = smul.u32 (!%p996_p13), 144, %s1034_s20  ;;  %s201_s29 = scalar_lea.sflag (!%p996_p13), [#allocation4], %s1034_s20 }
  0x2c   : > { %s1038_s30 = scalar_lea.vmem (!%p996_p13), [#allocation3], %s732_s27 }
  0x2e   : > { %878 = dma.done.wait (%p981_p6), %s201_s29, 2304  }
  0x2f   : > { %880 = vsyncadd (%p981_p6), %s201_s29, 4294964992 }
  0x30   : > { %882 = dma.done.wait (%p41_p4), [#allocation7], 768  }
  0x31   : > { %884 = vsyncadd (%p41_p4), [#allocation7], 4294966528  ;;  %vm269_vm0 = vcmask 1043456   ;;  %v243_v0 = vld [vmem:[#allocation6 + $0x8] sm:$0xf]  ;;  %v242_v2 = vld [vmem:[#allocation6] sm:$0xff] }
  0x32   : > { %v437_v1 = vld [vmem:[#allocation6 + $0x28] sm:$0xf]  ;;  %724 = vmatpush.msk.msra.mxu3 %vm269_vm0, %v243_v0  ;;  %v436_v3 = vld [vmem:[#allocation6 + $0x20] sm:$0xff]  ;;  %vm244_vm1 = vcmask 97280   ;;  %v333_v5 = vld [vmem:[#allocation6 + $0x18] sm:$0xf]  ;;  %675 = vmatpush.msk.msra.mxu0 %vm269_vm0, %v243_v0 }
  0x33   : > { %709 = vmatpush.msk.msra.mxu2 %vm269_vm0, %v437_v1  ;;  %v240_v4 = vld [vmem:[%s1038_s30 + $0x30] sm:$0xff]  ;;  %v701_v6 = vld [vmem:[%s1038_s30 + $0x8] sm:$0xff]  ;;  %692 = vmatpush.msk.msra.mxu1 %vm269_vm0, %v333_v5  ;;  %v234_v8 = vld [vmem:[%s1038_s30] sm:$0xff]  ;;  %s674_s26 = sshll.u32 %s1034_s20, 6  ;;  %s723_s19 = sshll.u32 %s957_s16, 6 }
  0x34   : > { %725 = vmatpush.msra.mxu3 %v242_v2  ;;  %v332_v7 = vld [vmem:[#allocation6 + $0x10] sm:$0xff]  ;;  %v684_v9 = vld [vmem:[%s1038_s30 + $0x48] sm:$0xff]  ;;  %288 = vmatpush.msra.mxu0 %v242_v2  ;;  %v241_v10 = vld [vmem:[%s1038_s30 + $0x38] sm:$0xff]  ;;  %s1102_s7 = scalar_lea.vmem [#allocation8], %s674_s26  ;;  %s578_s5 = scalar_lea.hbm %s1156_s3, %s723_s19 }
  0x35   : > { %480 = vmatpush.msra.mxu2 %v436_v3  ;;  %682 = vmatmul.msk.f32.vlgmr.msra.gmra.mxu3 %vm244_vm1, %v240_v4  ;;  %v702_v11 = vld [vmem:[%s1038_s30 + $0x10] sm:$0xff]  ;;  %v690_v13 = vld [vmem:[%s1038_s30 + $0x78] sm:$0xff]  ;;  %v691_v16 = vld [vmem:[%s1038_s30 + $0x80] sm:$0xff]  ;;  %s579_s6 = sshll.u32 %s1102_s7, 4  ;;  %s581_s16 = sshll.u32 %s578_s5, 4  ;;  %s580_s6 = int_to_ptr.vmem [resolvable:$true] %s579_s6  ;;  %s582_s16 = int_to_ptr.hbm [resolvable:$true] %s581_s16 }
  0x36   : > { %710 = vmatmul.msk.f32.vlgmr.msra.gmra.mxu2 %vm244_vm1, %v701_v6  ;;  %726 = vmatpush.msk.msrb.mxu3 %vm269_vm0, %v333_v5  ;;  %v685_v12 = vld [vmem:[%s1038_s30 + $0x50] sm:$0xff]  ;;  %v703_v14 = vld [vmem:[%s1038_s30 + $0x18] sm:$0xff]  ;;  %v704_v17 = vld [vmem:[%s1038_s30 + $0x20] sm:$0xff]  ;;  %s567_s8 = scalar_lea.sflag [#allocation5], %s1034_s20  ;;  %s847_s9 = sshra.s32 %s582_s16, 4  ;;  %s848_s9 = int_to_ptr.hbm [resolvable:$true] %s847_s9 }
  0x37   : > { %376 = vmatpush.msra.mxu1 %v332_v7  ;;  %676 = vmatmul.msk.f32.vlgmr.msra.gmra.mxu0 %vm244_vm1, %v234_v8  ;;  %v686_v15 = vld [vmem:[%s1038_s30 + $0x58] sm:$0xff]  ;;  %v687_v18 = vld [vmem:[%s1038_s30 + $0x60] sm:$0xff]  ;;  %v705_v19 = vld [vmem:[%s1038_s30 + $0x28] sm:$0xff]  ;;  %s849_s10 = scalar_lea.hbm %s848_s9, 64  ;;  %s853_s27 = scalar_lea.hbm %s1156_s3, 128 }
  0x38   : > { %693 = vmatmul.msk.f32.vlgmr.msra.gmra.mxu1 %vm244_vm1, %v684_v9  ;;  %727 = vmatpush.msrb.mxu3 %v332_v7  ;;  %v688_v20 = vld [vmem:[%s1038_s30 + $0x68] sm:$0xff]  ;;  %v708_v21 = vld [vmem:[%s1038_s30 + $0x40] sm:$0xff]  ;;  %v689_v22 = vld [vmem:[%s1038_s30 + $0x70] sm:$0xff]  ;;  %p850_p3 = scmp.ne.s32.totalorder %s848_s9, %s849_s10  ;;  %p854_p6 = scmp.lt.s32.totalorder %s848_s9, %s1156_s3 }
  0x39   : > { %v1098_v26 = vld [vmem:[%s1155_s2] ss:$0 sm:$0xff]  ;;  %p855_p7 = scmp.lt.s32.totalorder %s853_s27, %s849_s10 }
  0x3a   : > { %728 = vmatpush.msk.msra.mxu3 %vm269_vm0, %v437_v1  ;;  %p851_p4 = pnand %p850_p3, %p988_p11 }
  0x3b   : > { %p856_p8 = por %p855_p7, %p854_p6 }
  0x3c   : > { %729 = vmatpush.msra.mxu3 %v436_v3  ;;  %p852_p5 = pneg %p851_p4 }
  0x3d   : > { %683 = vmatmul.msk.f32.gmra.mxu3 %vm244_vm1, %v241_v10 }
  0x3e   : > { %711 = vmatmul.msk.f32.gmra.mxu2 %vm244_vm1, %v702_v11  ;;  %p857_p9 = pnand %p856_p8, %p852_p5 }
  0x3f   : > { %677 = vmatmul.msk.f32.gmra.mxu0 %vm244_vm1, %v701_v6 }
  0x40   : > { %694 = vmatmul.msk.f32.gmra.mxu1 %vm244_vm1, %v685_v12 }
  0x45   : > { %699 = vmatmul.msk.f32.vlgmr.msrb.gmra.mxu3 %vm244_vm1, %v690_v13 }
  0x46   : > { %712 = vmatmul.msk.f32.gmra.mxu2 %vm244_vm1, %v703_v14 }
  0x47   : > { %678 = vmatmul.msk.f32.gmra.mxu0 %vm244_vm1, %v702_v11 }
  0x48   : > { %695 = vmatmul.msk.f32.gmra.mxu1 %vm244_vm1, %v686_v15 }
  0x4d   : > { %700 = vmatmul.msk.f32.gmra.mxu3 %vm244_vm1, %v691_v16 }
  0x4e   : > { %713 = vmatmul.msk.f32.gmra.mxu2 %vm244_vm1, %v704_v17 }
  0x4f   : > { %679 = vmatmul.msk.f32.gmra.mxu0 %vm244_vm1, %v703_v14 }
  0x50   : > { %696 = vmatmul.msk.f32.gmra.mxu1 %vm244_vm1, %v687_v18 }
  0x55   : > { %716 = vmatmul.msk.f32.vlgmr.msra.gmra.mxu3 %vm244_vm1, %v241_v10 }
  0x56   : > { %714 = vmatmul.msk.f32.gmra.mxu2 %vm244_vm1, %v705_v19 }
  0x57   : > { %680 = vmatmul.msk.f32.gmra.mxu0 %vm244_vm1, %v704_v17 }
  0x58   : > { %697 = vmatmul.msk.f32.gmra.mxu1 %vm244_vm1, %v688_v20 }
  0x5d   : > { %717 = vmatmul.msk.f32.gmra.mxu3 %vm244_vm1, %v708_v21 }
  0x5e   : > { %715 = vmatmul.msk.f32.gmra.mxu2 %vm244_vm1, %v240_v4 }
  0x5f   : > { %681 = vmatmul.msk.f32.gmra.mxu0 %vm244_vm1, %v705_v19 }
  0x60   : > { %698 = vmatmul.msk.f32.gmra.mxu1 %vm244_vm1, %v689_v22 }
  0xb4   : > { %v290_v23 = vpop.f32.mrf.mxu0 }
  0xb5   : > { %v378_v24 = vpop.f32.mrf.mxu1 }
  0xb6   : > { %v410_v25 = vadd.f32 %v378_v24, %v290_v23 }
  0xb8   : > { %v308_v27 = vpop.f32.mrf.mxu3 }
  0xb9   : > { %v482_v28 = vpop.f32.mrf.mxu2 }
  0xba   : > { %v514_v29 = vadd.f32 %v482_v28, %v410_v25 }
  0xbc   : > { %v542_v30 = vadd.f32 %v1098_v26, %v514_v29  ;;  %v293_v31 = vpop.f32.mrf.mxu0 }
  0xbd   : > { %v381_v33 = vpop.f32.mrf.mxu1 }
  0xbe   : > { %v550_v32 = vmax.f32 %v542_v30, 0.0  ;;  %v411_v34 = vadd.f32 %v381_v33, %v293_v31 }
  0xc0   : > { %558 = vst [vmem:[%s1102_s7] sm:$0xff] %v550_v32  ;;  %v311_v35 = vpop.f32.mrf.mxu3 }
  0xc1   : > { %v485_v36 = vpop.f32.mrf.mxu2 }
  0xc2   : > { %v515_v37 = vadd.f32 %v485_v36, %v411_v34 }
  0xc4   : > { %v543_v38 = vadd.f32 %v1098_v26, %v515_v37  ;;  %v296_v39 = vpop.f32.mrf.mxu0 }
  0xc5   : > { %v384_v41 = vpop.f32.mrf.mxu1 }
  0xc6   : > { %v551_v40 = vmax.f32 %v543_v38, 0.0  ;;  %v412_v42 = vadd.f32 %v384_v41, %v296_v39 }
  0xc8   : > { %559 = vst [vmem:[%s1102_s7 + $0x8] sm:$0xff] %v551_v40  ;;  %v396_v43 = vpop.f32.mrf.mxu3 }
  0xc9   : > { %v488_v44 = vpop.f32.mrf.mxu2  ;;  %v416_v59 = vadd.f32 %v396_v43, %v308_v27 }
  0xca   : > { %v516_v45 = vadd.f32 %v488_v44, %v412_v42 }
  0xcc   : > { %v544_v46 = vadd.f32 %v1098_v26, %v516_v45  ;;  %v299_v47 = vpop.f32.mrf.mxu0 }
  0xcd   : > { %v387_v49 = vpop.f32.mrf.mxu1 }
  0xce   : > { %v552_v48 = vmax.f32 %v544_v46, 0.0  ;;  %v413_v50 = vadd.f32 %v387_v49, %v299_v47 }
  0xd0   : > { %560 = vst [vmem:[%s1102_s7 + $0x10] sm:$0xff] %v552_v48  ;;  %v399_v51 = vpop.f32.mrf.mxu3 }
  0xd1   : > { %v491_v52 = vpop.f32.mrf.mxu2  ;;  %v417_v7 = vadd.f32 %v399_v51, %v311_v35 }
  0xd2   : > { %v517_v53 = vadd.f32 %v491_v52, %v413_v50 }
  0xd4   : > { %v545_v54 = vadd.f32 %v1098_v26, %v517_v53  ;;  %v302_v55 = vpop.f32.mrf.mxu0 }
  0xd5   : > { %v390_v57 = vpop.f32.mrf.mxu1 }
  0xd6   : > { %v553_v56 = vmax.f32 %v545_v54, 0.0  ;;  %v414_v58 = vadd.f32 %v390_v57, %v302_v55 }
  0xd8   : > { %561 = vst [vmem:[%s1102_s7 + $0x18] sm:$0xff] %v553_v56  ;;  %v500_v61 = vpop.f32.mrf.mxu3 }
  0xd9   : > { %v494_v60 = vpop.f32.mrf.mxu2  ;;  %v520_v63 = vadd.f32 %v500_v61, %v416_v59 }
  0xda   : > { %v518_v62 = vadd.f32 %v494_v60, %v414_v58 }
  0xdb   : > { %v548_v1 = vadd.f32 %v1098_v26, %v520_v63 }
  0xdc   : > { %v546_v0 = vadd.f32 %v1098_v26, %v518_v62  ;;  %v305_v2 = vpop.f32.mrf.mxu0 }
  0xdd   : > { %v556_v4 = vmax.f32 %v548_v1, 0.0  ;;  %v393_v5 = vpop.f32.mrf.mxu1 }
  0xde   : > { %v554_v3 = vmax.f32 %v546_v0, 0.0  ;;  %v415_v6 = vadd.f32 %v393_v5, %v305_v2 }
  0xdf   : > { %564 = vst [vmem:[%s1102_s7 + $0x30] sm:$0xff] %v556_v4 }
  0xe0   : > { %562 = vst [vmem:[%s1102_s7 + $0x20] sm:$0xff] %v554_v3  ;;  %v503_v9 = vpop.f32.mrf.mxu3 }
  0xe1   : > { %v497_v8 = vpop.f32.mrf.mxu2  ;;  %v521_v11 = vadd.f32 %v503_v9, %v417_v7 }
  0xe2   : > { %v519_v10 = vadd.f32 %v497_v8, %v415_v6 }
  0xe3   : > { %v549_v13 = vadd.f32 %v1098_v26, %v521_v11 }
  0xe4   : > { %v547_v12 = vadd.f32 %v1098_v26, %v519_v10 }
  0xe5   : > { %v557_v15 = vmax.f32 %v549_v13, 0.0 }
  0xe6   : > { %v555_v14 = vmax.f32 %v547_v12, 0.0 }
  0xe7   : > { %565 = vst [vmem:[%s1102_s7 + $0x38] sm:$0xff] %v557_v15 }
  0xe8   : > { %563 = vst [vmem:[%s1102_s7 + $0x28] sm:$0xff] %v555_v14 }
  0xe9   : > { %860 = shalt.err (!%p857_p9)
}
  0xea   : > { %s914_s20 = smov 128   ;;  %s915_s22 = smov 8  }
  0xeb   : > { %746 = dma.vmem_to_hbm [thread:$0]  (%p988_p11), %s580_s6, 1024, %s582_s16, %s567_s8, %s914_s20, %s914_s20, %s915_s22  }
  0xec PF: > { %s596_s23 = sand.u32 1, %s891_s12   ;;  %p753_p10 = pnand %p668_p2, %p992_p12 }
  0xed   : > { %s597_s26 = scalar_lea.sflag [#allocation5], %s596_s23 }
  0xee   : > { %p754_p13 = pneg %p753_p10 }
  0xf0   : > { %886 = dma.done.wait (%p754_p13), %s597_s26, 1024  }
  0xf1   : > { %888 = vsyncadd (%p754_p13), %s597_s26, 4294966272  ;;  %p17_p1 = scmp.ge.s32.totalorder %s961_s18, 4   ;;  %s1162_s12 = smov %s895_s13 }
  0xf2   : > { %s1163_s13 = smov %s899_s14  ;;  %s1164_s14 = smov %s973_s21 }
  0xf3   : > { %s1165_s15 = smov %s961_s18  ;;  %19 = sbr.rel (!%p17_p1) target bundleno = 6 (0x6), region = 90 }
  0xf8   :  { %603 = vsyncpa [#allocation4], 1 }
  0xf9   :  { %605 = vsyncpa [#allocation4 + $0x1], 1 }
  0xfa   :  { %606 = vsyncpa [#allocation7], 1 }
  0xfb   :  { %607 = vsyncpa [#allocation5], 1 }
  0xfc   :  { %609 = vsyncpa [#allocation5 + $0x1], 1 }

// kernel: tpu_custom_call.1
= control target key start
LH: loop header
LB: loop body
LE: loop exit
PB: predicated region body
PF: predicated region fallthrough
CT: control target
= control target key end

     0   :  { %8 = vsyncpa [#allocation4], 0  ;;  %s1153_s0 = inlined_call_operand.hbm [shape: f32[2,2,9,8,12], index: 0, kind: input, shape index: {}]   ;;  %s1154_s1 = inlined_call_operand.hbm [shape: f32[3,12,128], index: 1, kind: input, shape index: {}]   ;;  %s1155_s2 = inlined_call_operand.vmem [shape: f32[1,128], index: 2, kind: input, shape index: {}]   ;;  %s1156_s3 = inlined_call_operand.hbm [shape: f32[128,128], index: 3, kind: output, shape index: {}]  }
   0x1   :  { %10 = vsyncpa [#allocation4 + $0x1], 0 }
   0x2   :  { %11 = vsyncpa [#allocation7], 0 }
   0x3   :  { %12 = vsyncpa [#allocation5], 0 }
   0x4   :  { %14 = vsyncpa [#allocation5 + $0x1], 0  ;;  %s936_s12 = smov 0   ;;  %s938_s13 = smov 0  }
   0x5   :  { %s940_s14 = smov 0   ;;  %s942_s15 = smov 0  }
   0x6 LB: > { %s957_s16 = sadd.s32 4294967295, %s903_s15   ;;  %s665_s17 = sadd.s32 4294967294, %s903_s15   ;;  %s903_s15 = sphi %s942_s15, %s1165_s15   ;;  %s899_s14 = sphi %s940_s14, %s1164_s14   ;;  %s895_s13 = sphi %s938_s13, %s1163_s13   ;;  %s891_s12 = sphi %s936_s12, %s1162_s12  }
   0x7   : > { %s961_s18 = sadd.s32 1, %s903_s15   ;;  %s27_s19 = sadd.s32 1, %s899_s14 }
   0x8   : > { %s24_s20 = ssub.s32 %s903_s15, %s961_s18  ;;  %p34_p0 = scmp.ne.s32.totalorder %s899_s14, %s895_s13 }
   0x9   : > { %p25_p1 = scmp.eq.s32.totalorder %s24_s20, 0  ;;  %p35_p2 = scmp.eq.s32.totalorder %s903_s15, 0 }
   0xa   : > { %p40_p3 = scmp.ne.s32.totalorder %s895_s13, %s891_s12  ;;  %p41_p4 = scmp.eq.s32.totalorder %s957_s16, 0 }
   0xb   : > { %s973_s21 = scalar_select %p25_p1, %s899_s14, %s27_s19  }
   0xc   : > { %p975_p5 = por %p35_p2, %p34_p0  ;;  %p981_p6 = por %p41_p4, %p40_p3 }
   0xd   : > { %p106_p7 = scmp.eq.s32.totalorder %s957_s16, 1  ;;  %p112_p8 = scmp.eq.s32.totalorder %s665_s17, 1 }
   0xe   : > { %p666_p9 = scmp.ge.s32.totalorder %s903_s15, 1  ;;  %p119_p10 = scmp.lt.s32.totalorder %s903_s15, 3 }
   0xf   : > { %p988_p11 = por %p106_p7, %p34_p0  ;;  %p992_p12 = por %p112_p8, %p40_p3 }
  0x10   : > { %p996_p13 = pnand %p666_p9, %p119_p10  ;;  %s130_s29 = sshll.u32 %s1154_s1, 4  ;;  %s131_s29 = int_to_ptr.hbm [resolvable:$true] %s130_s29 }
  0x11   : > { %s905_s30 = smov [#allocation6]   ;;  %s906_s5 = smov 128  }
  0x12   : > { %p748_p1 = pneg %p996_p13  ;;  %s132_s4 = sshll.u32 %s905_s30, 4  ;;  %s133_s4 = int_to_ptr.vmem [resolvable:$true] %s132_s4 }
  0x13   : > { %s907_s6 = smov 8   ;;  %p668_p2 = scmp.ge.s32.totalorder %s903_s15, 2 }
  0x14   : > { %p749_p0 = pnand %p748_p1, %p41_p4 }
  0x15   : > { %145 = sbr.rel (%p668_p2) target bundleno = 41 (0x29), region = 24 }
  0x16   : > { %751 = dma.hbm_to_vmem [thread:$0]  (!%p749_p0), %s131_s29, 768, %s133_s4, [#allocation7], %s906_s5, %s906_s5, %s907_s6  }
  0x1a   : > { %s149_s7 = sand.u32 1, %s899_s14   ;;  %s731_s8 = smul.u32 72, %s903_s15 }
  0x1b   : > { %s730_s9 = smul.u32 144, %s149_s7  ;;  %s908_s30 = smov 2304  }
  0x1c   : > { %s158_s17 = scalar_lea.hbm %s1153_s0, %s731_s8  ;;  %736 = sst [smem:[#allocation10]] (%p975_p5), %s908_s30 }
  0x1d   : > { %s171_s19 = sshll.u32 %s158_s17, 4  ;;  %s153_s27 = scalar_lea.vmem [#allocation3], %s730_s9  ;;  %s172_s19 = int_to_ptr.hbm [resolvable:$true] %s171_s19 }
  0x1e   : > { %s735_s20 = scalar_select %p975_p5, [#allocation0], [#allocation11] }
  0x1f   : > { %s173_s28 = sshll.u32 %s153_s27, 4  ;;  %s909_s4 = smov 1152   ;;  %s174_s28 = int_to_ptr.vmem [resolvable:$true] %s173_s28 }
  0x20   : > { %s163_s29 = sld [smem:[%s735_s20]]   ;;  %s910_s5 = smov 9  }
  0x21   : > { %737 = sst [smem:[#allocation10 + $0x1]] (%p975_p5), %s909_s4  ;;  %s911_s6 = smov 128  }
  0x22   : > { %738 = sst [smem:[#allocation10 + $0x2]] (%p975_p5), %s910_s5  ;;  %s912_s9 = smov 8  }
  0x23   : > { %739 = sst [smem:[#allocation10 + $0x3]] (%p975_p5), %s911_s6  ;;  %s150_s11 = scalar_lea.sflag [#allocation4], %s149_s7 }
  0x24   : > { %740 = sst [smem:[#allocation10 + $0x4]] (%p975_p5), %s911_s6  ;;  %s913_s17 = smov [#allocation9]  }
  0x25   : > { %741 = sst [smem:[#allocation10 + $0x5]] (%p975_p5), %s912_s9 }
  0x26   : > { %s670_s8 = sshll.u32 %s163_s29, 26 }
  0x27   : > { %s671_s10 = sadd.s32 134217728, %s670_s8 }
  0x28   : > { %742 = dma.general (%p975_p5), %s172_s19, 2304, %s174_s28, %s150_s11, %s913_s17, [#allocation10], %s671_s10, 0  }
  0x29 PF: > { %198 = sbr.rel (%p996_p13) target bundleno = 236 (0xec), region = 32  ;;  %s1034_s20 = sand.u32 (!%p996_p13), 1, %s895_s13  }
  0x2a   : > { %s732_s27 = smul.u32 (!%p996_p13), 144, %s1034_s20  ;;  %s201_s29 = scalar_lea.sflag (!%p996_p13), [#allocation4], %s1034_s20 }
  0x2c   : > { %s1038_s30 = scalar_lea.vmem (!%p996_p13), [#allocation3], %s732_s27 }
  0x2e   : > { %878 = dma.done.wait (%p981_p6), %s201_s29, 2304  }
  0x2f   : > { %880 = vsyncadd (%p981_p6), %s201_s29, 4294964992 }
  0x30   : > { %882 = dma.done.wait (%p41_p4), [#allocation7], 768  }
  0x31   : > { %884 = vsyncadd (%p41_p4), [#allocation7], 4294966528  ;;  %vm269_vm0 = vcmask 1043456   ;;  %v243_v0 = vld [vmem:[#allocation6 + $0x8] sm:$0xf]  ;;  %v242_v2 = vld [vmem:[#allocation6] sm:$0xff] }
  0x32   : > { %v437_v1 = vld [vmem:[#allocation6 + $0x28] sm:$0xf]  ;;  %724 = vmatpush.msk.msra.mxu3 %vm269_vm0, %v243_v0  ;;  %v436_v3 = vld [vmem:[#allocation6 + $0x20] sm:$0xff]  ;;  %vm244_vm1 = vcmask 97280   ;;  %v333_v5 = vld [vmem:[#allocation6 + $0x18] sm:$0xf]  ;;  %675 = vmatpush.msk.msra.mxu0 %vm269_vm0, %v243_v0 }
  0x33   : > { %709 = vmatpush.msk.msra.mxu2 %vm269_vm0, %v437_v1  ;;  %v240_v4 = vld [vmem:[%s1038_s30 + $0x30] sm:$0xff]  ;;  %v701_v6 = vld [vmem:[%s1038_s30 + $0x8] sm:$0xff]  ;;  %692 = vmatpush.msk.msra.mxu1 %vm269_vm0, %v333_v5  ;;  %v234_v8 = vld [vmem:[%s1038_s30] sm:$0xff]  ;;  %s674_s26 = sshll.u32 %s1034_s20, 6  ;;  %s723_s19 = sshll.u32 %s957_s16, 6 }
  0x34   : > { %725 = vmatpush.msra.mxu3 %v242_v2  ;;  %v332_v7 = vld [vmem:[#allocation6 + $0x10] sm:$0xff]  ;;  %v684_v9 = vld [vmem:[%s1038_s30 + $0x48] sm:$0xff]  ;;  %288 = vmatpush.msra.mxu0 %v242_v2  ;;  %v241_v10 = vld [vmem:[%s1038_s30 + $0x38] sm:$0xff]  ;;  %s1102_s7 = scalar_lea.vmem [#allocation8], %s674_s26  ;;  %s578_s5 = scalar_lea.hbm %s1156_s3, %s723_s19 }
  0x35   : > { %480 = vmatpush.msra.mxu2 %v436_v3  ;;  %682 = vmatmul.msk.f32.vlgmr.msra.gmra.mxu3 %vm244_vm1, %v240_v4  ;;  %v702_v11 = vld [vmem:[%s1038_s30 + $0x10] sm:$0xff]  ;;  %v690_v13 = vld [vmem:[%s1038_s30 + $0x78] sm:$0xff]  ;;  %v691_v16 = vld [vmem:[%s1038_s30 + $0x80] sm:$0xff]  ;;  %s579_s6 = sshll.u32 %s1102_s7, 4  ;;  %s581_s16 = sshll.u32 %s578_s5, 4  ;;  %s580_s6 = int_to_ptr.vmem [resolvable:$true] %s579_s6  ;;  %s582_s16 = int_to_ptr.hbm [resolvable:$true] %s581_s16 }
  0x36   : > { %710 = vmatmul.msk.f32.vlgmr.msra.gmra.mxu2 %vm244_vm1, %v701_v6  ;;  %726 = vmatpush.msk.msrb.mxu3 %vm269_vm0, %v333_v5  ;;  %v685_v12 = vld [vmem:[%s1038_s30 + $0x50] sm:$0xff]  ;;  %v703_v14 = vld [vmem:[%s1038_s30 + $0x18] sm:$0xff]  ;;  %v704_v17 = vld [vmem:[%s1038_s30 + $0x20] sm:$0xff]  ;;  %s567_s8 = scalar_lea.sflag [#allocation5], %s1034_s20  ;;  %s847_s9 = sshra.s32 %s582_s16, 4  ;;  %s848_s9 = int_to_ptr.hbm [resolvable:$true] %s847_s9 }
  0x37   : > { %376 = vmatpush.msra.mxu1 %v332_v7  ;;  %676 = vmatmul.msk.f32.vlgmr.msra.gmra.mxu0 %vm244_vm1, %v234_v8  ;;  %v686_v15 = vld [vmem:[%s1038_s30 + $0x58] sm:$0xff]  ;;  %v687_v18 = vld [vmem:[%s1038_s30 + $0x60] sm:$0xff]  ;;  %v705_v19 = vld [vmem:[%s1038_s30 + $0x28] sm:$0xff]  ;;  %s849_s10 = scalar_lea.hbm %s848_s9, 64  ;;  %s853_s27 = scalar_lea.hbm %s1156_s3, 128 }
  0x38   : > { %693 = vmatmul.msk.f32.vlgmr.msra.gmra.mxu1 %vm244_vm1, %v684_v9  ;;  %727 = vmatpush.msrb.mxu3 %v332_v7  ;;  %v688_v20 = vld [vmem:[%s1038_s30 + $0x68] sm:$0xff]  ;;  %v708_v21 = vld [vmem:[%s1038_s30 + $0x40] sm:$0xff]  ;;  %v689_v22 = vld [vmem:[%s1038_s30 + $0x70] sm:$0xff]  ;;  %p850_p3 = scmp.ne.s32.totalorder %s848_s9, %s849_s10  ;;  %p854_p6 = scmp.lt.s32.totalorder %s848_s9, %s1156_s3 }
  0x39   : > { %v1098_v26 = vld [vmem:[%s1155_s2] ss:$0 sm:$0xff]  ;;  %p855_p7 = scmp.lt.s32.totalorder %s853_s27, %s849_s10 }
  0x3a   : > { %728 = vmatpush.msk.msra.mxu3 %vm269_vm0, %v437_v1  ;;  %p851_p4 = pnand %p850_p3, %p988_p11 }
  0x3b   : > { %p856_p8 = por %p855_p7, %p854_p6 }
  0x3c   : > { %729 = vmatpush.msra.mxu3 %v436_v3  ;;  %p852_p5 = pneg %p851_p4 }
  0x3d   : > { %683 = vmatmul.msk.f32.gmra.mxu3 %vm244_vm1, %v241_v10 }
  0x3e   : > { %711 = vmatmul.msk.f32.gmra.mxu2 %vm244_vm1, %v702_v11  ;;  %p857_p9 = pnand %p856_p8, %p852_p5 }
  0x3f   : > { %677 = vmatmul.msk.f32.gmra.mxu0 %vm244_vm1, %v701_v6 }
  0x40   : > { %694 = vmatmul.msk.f32.gmra.mxu1 %vm244_vm1, %v685_v12 }
  0x45   : > { %699 = vmatmul.msk.f32.vlgmr.msrb.gmra.mxu3 %vm244_vm1, %v690_v13 }
  0x46   : > { %712 = vmatmul.msk.f32.gmra.mxu2 %vm244_vm1, %v703_v14 }
  0x47   : > { %678 = vmatmul.msk.f32.gmra.mxu0 %vm244_vm1, %v702_v11 }
  0x48   : > { %695 = vmatmul.msk.f32.gmra.mxu1 %vm244_vm1, %v686_v15 }
  0x4d   : > { %700 = vmatmul.msk.f32.gmra.mxu3 %vm244_vm1, %v691_v16 }
  0x4e   : > { %713 = vmatmul.msk.f32.gmra.mxu2 %vm244_vm1, %v704_v17 }
  0x4f   : > { %679 = vmatmul.msk.f32.gmra.mxu0 %vm244_vm1, %v703_v14 }
  0x50   : > { %696 = vmatmul.msk.f32.gmra.mxu1 %vm244_vm1, %v687_v18 }
  0x55   : > { %716 = vmatmul.msk.f32.vlgmr.msra.gmra.mxu3 %vm244_vm1, %v241_v10 }
  0x56   : > { %714 = vmatmul.msk.f32.gmra.mxu2 %vm244_vm1, %v705_v19 }
  0x57   : > { %680 = vmatmul.msk.f32.gmra.mxu0 %vm244_vm1, %v704_v17 }
  0x58   : > { %697 = vmatmul.msk.f32.gmra.mxu1 %vm244_vm1, %v688_v20 }
  0x5d   : > { %717 = vmatmul.msk.f32.gmra.mxu3 %vm244_vm1, %v708_v21 }
  0x5e   : > { %715 = vmatmul.msk.f32.gmra.mxu2 %vm244_vm1, %v240_v4 }
  0x5f   : > { %681 = vmatmul.msk.f32.gmra.mxu0 %vm244_vm1, %v705_v19 }
  0x60   : > { %698 = vmatmul.msk.f32.gmra.mxu1 %vm244_vm1, %v689_v22 }
  0xb4   : > { %v290_v23 = vpop.f32.mrf.mxu0 }
  0xb5   : > { %v378_v24 = vpop.f32.mrf.mxu1 }
  0xb6   : > { %v410_v25 = vadd.f32 %v378_v24, %v290_v23 }
  0xb8   : > { %v308_v27 = vpop.f32.mrf.mxu3 }
  0xb9   : > { %v482_v28 = vpop.f32.mrf.mxu2 }
  0xba   : > { %v514_v29 = vadd.f32 %v482_v28, %v410_v25 }
  0xbc   : > { %v542_v30 = vadd.f32 %v1098_v26, %v514_v29  ;;  %v293_v31 = vpop.f32.mrf.mxu0 }
  0xbd   : > { %v381_v33 = vpop.f32.mrf.mxu1 }
  0xbe   : > { %v550_v32 = vmax.f32 %v542_v30, 0.0  ;;  %v411_v34 = vadd.f32 %v381_v33, %v293_v31 }
  0xc0   : > { %558 = vst [vmem:[%s1102_s7] sm:$0xff] %v550_v32  ;;  %v311_v35 = vpop.f32.mrf.mxu3 }
  0xc1   : > { %v485_v36 = vpop.f32.mrf.mxu2 }
  0xc2   : > { %v515_v37 = vadd.f32 %v485_v36, %v411_v34 }
  0xc4   : > { %v543_v38 = vadd.f32 %v1098_v26, %v515_v37  ;;  %v296_v39 = vpop.f32.mrf.mxu0 }
  0xc5   : > { %v384_v41 = vpop.f32.mrf.mxu1 }
  0xc6   : > { %v551_v40 = vmax.f32 %v543_v38, 0.0  ;;  %v412_v42 = vadd.f32 %v384_v41, %v296_v39 }
  0xc8   : > { %559 = vst [vmem:[%s1102_s7 + $0x8] sm:$0xff] %v551_v40  ;;  %v396_v43 = vpop.f32.mrf.mxu3 }
  0xc9   : > { %v488_v44 = vpop.f32.mrf.mxu2  ;;  %v416_v59 = vadd.f32 %v396_v43, %v308_v27 }
  0xca   : > { %v516_v45 = vadd.f32 %v488_v44, %v412_v42 }
  0xcc   : > { %v544_v46 = vadd.f32 %v1098_v26, %v516_v45  ;;  %v299_v47 = vpop.f32.mrf.mxu0 }
  0xcd   : > { %v387_v49 = vpop.f32.mrf.mxu1 }
  0xce   : > { %v552_v48 = vmax.f32 %v544_v46, 0.0  ;;  %v413_v50 = vadd.f32 %v387_v49, %v299_v47 }
  0xd0   : > { %560 = vst [vmem:[%s1102_s7 + $0x10] sm:$0xff] %v552_v48  ;;  %v399_v51 = vpop.f32.mrf.mxu3 }
  0xd1   : > { %v491_v52 = vpop.f32.mrf.mxu2  ;;  %v417_v7 = vadd.f32 %v399_v51, %v311_v35 }
  0xd2   : > { %v517_v53 = vadd.f32 %v491_v52, %v413_v50 }
  0xd4   : > { %v545_v54 = vadd.f32 %v1098_v26, %v517_v53  ;;  %v302_v55 = vpop.f32.mrf.mxu0 }
  0xd5   : > { %v390_v57 = vpop.f32.mrf.mxu1 }
  0xd6   : > { %v553_v56 = vmax.f32 %v545_v54, 0.0  ;;  %v414_v58 = vadd.f32 %v390_v57, %v302_v55 }
  0xd8   : > { %561 = vst [vmem:[%s1102_s7 + $0x18] sm:$0xff] %v553_v56  ;;  %v500_v61 = vpop.f32.mrf.mxu3 }
  0xd9   : > { %v494_v60 = vpop.f32.mrf.mxu2  ;;  %v520_v63 = vadd.f32 %v500_v61, %v416_v59 }
  0xda   : > { %v518_v62 = vadd.f32 %v494_v60, %v414_v58 }
  0xdb   : > { %v548_v1 = vadd.f32 %v1098_v26, %v520_v63 }
  0xdc   : > { %v546_v0 = vadd.f32 %v1098_v26, %v518_v62  ;;  %v305_v2 = vpop.f32.mrf.mxu0 }
  0xdd   : > { %v556_v4 = vmax.f32 %v548_v1, 0.0  ;;  %v393_v5 = vpop.f32.mrf.mxu1 }
  0xde   : > { %v554_v3 = vmax.f32 %v546_v0, 0.0  ;;  %v415_v6 = vadd.f32 %v393_v5, %v305_v2 }
  0xdf   : > { %564 = vst [vmem:[%s1102_s7 + $0x30] sm:$0xff] %v556_v4 }
  0xe0   : > { %562 = vst [vmem:[%s1102_s7 + $0x20] sm:$0xff] %v554_v3  ;;  %v503_v9 = vpop.f32.mrf.mxu3 }
  0xe1   : > { %v497_v8 = vpop.f32.mrf.mxu2  ;;  %v521_v11 = vadd.f32 %v503_v9, %v417_v7 }
  0xe2   : > { %v519_v10 = vadd.f32 %v497_v8, %v415_v6 }
  0xe3   : > { %v549_v13 = vadd.f32 %v1098_v26, %v521_v11 }
  0xe4   : > { %v547_v12 = vadd.f32 %v1098_v26, %v519_v10 }
  0xe5   : > { %v557_v15 = vmax.f32 %v549_v13, 0.0 }
  0xe6   : > { %v555_v14 = vmax.f32 %v547_v12, 0.0 }
  0xe7   : > { %565 = vst [vmem:[%s1102_s7 + $0x38] sm:$0xff] %v557_v15 }
  0xe8   : > { %563 = vst [vmem:[%s1102_s7 + $0x28] sm:$0xff] %v555_v14 }
  0xe9   : > { %860 = shalt.err (!%p857_p9)
}
  0xea   : > { %s914_s20 = smov 128   ;;  %s915_s22 = smov 8  }
  0xeb   : > { %746 = dma.vmem_to_hbm [thread:$0]  (%p988_p11), %s580_s6, 1024, %s582_s16, %s567_s8, %s914_s20, %s914_s20, %s915_s22  }
  0xec PF: > { %s596_s23 = sand.u32 1, %s891_s12   ;;  %p753_p10 = pnand %p668_p2, %p992_p12 }
  0xed   : > { %s597_s26 = scalar_lea.sflag [#allocation5], %s596_s23 }
  0xee   : > { %p754_p13 = pneg %p753_p10 }
  0xf0   : > { %886 = dma.done.wait (%p754_p13), %s597_s26, 1024  }
  0xf1   : > { %888 = vsyncadd (%p754_p13), %s597_s26, 4294966272  ;;  %p17_p1 = scmp.ge.s32.totalorder %s961_s18, 4   ;;  %s1162_s12 = smov %s895_s13 }
  0xf2   : > { %s1163_s13 = smov %s899_s14  ;;  %s1164_s14 = smov %s973_s21 }
  0xf3   : > { %s1165_s15 = smov %s961_s18  ;;  %19 = sbr.rel (!%p17_p1) target bundleno = 6 (0x6), region = 90 }
  0xf8   :  { %603 = vsyncpa [#allocation4], 1 }
  0xf9   :  { %605 = vsyncpa [#allocation4 + $0x1], 1 }
  0xfa   :  { %606 = vsyncpa [#allocation7], 1 }
  0xfb   :  { %607 = vsyncpa [#allocation5], 1 }
  0xfc   :  { %609 = vsyncpa [#allocation5 + $0x1], 1 }

</bundles_post_ra>
